<compile_context>
chip_gen: v5e
topology: v5e:2x2
jax: 0.10.0
libtpu: 0.0.40
codegen_flags: <defaults>
</compile_context>

<pallas_src>
import functools

import jax
import jax.numpy as jnp
from jax.experimental import pallas as pl
from jax.experimental.pallas import tpu as pltpu


def _se_kernel(x_ref, w1_ref, b1_ref, w2_ref, b2_ref, o_ref, *, inv_hw):
    # x_ref : (1, C, HW)  one image, channels on sublanes, spatial on lanes
    # w1_ref: (S, C)      fc1 (squeeze) weight
    # b1_ref: (S, 1)      fc1 bias
    # w2_ref: (C, S)      fc2 (excite) weight
    # b2_ref: (C, 1)      fc2 bias
    # o_ref : (1, C, HW)
    x = x_ref[0].astype(jnp.float32)                        # (C, HW)

    # Global average pool: lane reduction -> per-channel column vector.
    pooled = jnp.sum(x, axis=1, keepdims=True) * inv_hw     # (C, 1)

    # fc1 (1x1 conv) + ReLU, column orientation (no transposes anywhere).
    z = jnp.dot(w1_ref[...], pooled, preferred_element_type=jnp.float32)
    z = jnp.maximum(z + b1_ref[...], 0.0)                   # (S, 1)

    # fc2 (1x1 conv) + sigmoid gate.
    s = jnp.dot(w2_ref[...], z, preferred_element_type=jnp.float32)
    s = jax.nn.sigmoid(s + b2_ref[...])                     # (C, 1)

    # Per-channel scale broadcast along lanes; lane-dense store (HW % 128 == 0).
    o_ref[0] = (x * s).astype(o_ref.dtype)


def squeeze_excitation(x_nchw, fc1_w, fc1_b, fc2_w, fc2_b):
    """SqueezeExcitation forward.

    x_nchw: (N, C, H, W) float32  (PyTorch layout, used as-is: no transpose)
    fc1_w : (S, C, 1, 1), fc1_b: (S,)
    fc2_w : (C, S, 1, 1), fc2_b: (C,)
    Returns (N, C, H, W).
    """
    N, C, H, W = x_nchw.shape
    S = fc1_w.shape[0]
    HW = H * W

    # Free (contiguous) reshapes in the wrapper -- no data movement.
    x_flat = x_nchw.reshape(N, C, HW)
    w1 = fc1_w.reshape(S, C)
    b1 = fc1_b.reshape(S, 1)
    w2 = fc2_w.reshape(C, S)
    b2 = fc2_b.reshape(C, 1)

    out = pl.pallas_call(
        functools.partial(_se_kernel, inv_hw=float(1.0 / HW)),
        out_shape=jax.ShapeDtypeStruct((N, C, HW), x_nchw.dtype),
        grid_spec=pltpu.PrefetchScalarGridSpec(
            num_scalar_prefetch=0,
            grid=(N,),
            in_specs=[
                pl.BlockSpec((1, C, HW), lambda n: (n, 0, 0)),   # image
                pl.BlockSpec((S, C), lambda n: (0, 0)),          # fc1 w (tiny const)
                pl.BlockSpec((S, 1), lambda n: (0, 0)),          # fc1 b
                pl.BlockSpec((C, S), lambda n: (0, 0)),          # fc2 w
                pl.BlockSpec((C, 1), lambda n: (0, 0)),          # fc2 b
            ],
            out_specs=pl.BlockSpec((1, C, HW), lambda n: (n, 0, 0)),
        ),
        compiler_params=pltpu.CompilerParams(
            dimension_semantics=("parallel",)),
    )(x_flat, w1, b1, w2, b2)
    return out.reshape(N, C, H, W)


def _reference(x, fc1_w, fc1_b, fc2_w, fc2_b):
    """Pure-JAX reference of torchvision SqueezeExcitation (ReLU + Sigmoid)."""
    N, C, H, W = x.shape
    S = fc1_w.shape[0]
    pooled = jnp.mean(x, axis=(2, 3))                               # (N, C)
    z = jnp.maximum(pooled @ fc1_w.reshape(S, C).T + fc1_b, 0.0)    # (N, S)
    s = jax.nn.sigmoid(z @ fc2_w.reshape(C, S).T + fc2_b)           # (N, C)
    return x * s[:, :, None, None]


if __name__ == "__main__":
    key = jax.random.PRNGKey(0)
    N, C, H, W = 2, 4, 16, 16       # PyTorch input (N, C, H, W)
    S = 2                           # squeeze_channels

    k = jax.random.split(key, 5)
    x = jax.random.normal(k[0], (N, C, H, W), dtype=jnp.float32)
    fc1_w = jax.random.normal(k[1], (S, C, 1, 1), dtype=jnp.float32) * 0.5
    fc1_b = jax.random.normal(k[2], (S,), dtype=jnp.float32) * 0.1
    fc2_w = jax.random.normal(k[3], (C, S, 1, 1), dtype=jnp.float32) * 0.5
    fc2_b = jax.random.normal(k[4], (C,), dtype=jnp.float32) * 0.1

    out = squeeze_excitation(x, fc1_w, fc1_b, fc2_w, fc2_b)
    out = jax.block_until_ready(out)

    ref = _reference(x, fc1_w, fc1_b, fc2_w, fc2_b)
    assert out.shape == (N, C, H, W)
    assert jnp.allclose(out, ref, atol=1e-4, rtol=1e-4), "mismatch vs JAX reference"

    print("KERNEL_OK")
</pallas_src>

<mosaic_0001>
module attributes {stable_mosaic.version = 11 : i64} {
  func.func @_se_kernel(%arg0: i32, %arg1: memref<1x4x256xf32, #tpu.memory_space<vmem>>, %arg2: memref<2x4xf32, #tpu.memory_space<vmem>>, %arg3: memref<2x1xf32, #tpu.memory_space<vmem>>, %arg4: memref<4x2xf32, #tpu.memory_space<vmem>>, %arg5: memref<4x1xf32, #tpu.memory_space<vmem>>, %arg6: memref<1x4x256xf32, #tpu.memory_space<vmem>>) attributes {dimension_semantics = [#tpu.dimension_semantics<parallel>], iteration_bounds = array<i64: 2>, scalar_prefetch = 0 : i64, scratch_operands = 0 : i64, tpu.core_type = #tpu.core_type<tc>, window_params = [{transform_indices = @transform_0, window_bounds = array<i64: 1, 4, 256>}, {pipeline_mode = #tpu.pipeline_mode<synchronous>, transform_indices = @transform_1, window_bounds = array<i64: 2, 4>}, {pipeline_mode = #tpu.pipeline_mode<synchronous>, transform_indices = @transform_2, window_bounds = array<i64: 2, 1>}, {pipeline_mode = #tpu.pipeline_mode<synchronous>, transform_indices = @transform_3, window_bounds = array<i64: 4, 2>}, {pipeline_mode = #tpu.pipeline_mode<synchronous>, transform_indices = @transform_4, window_bounds = array<i64: 4, 1>}, {transform_indices = @transform_5, window_bounds = array<i64: 1, 4, 256>}]} {
    %c0 = arith.constant 0 : index
    %c0_0 = arith.constant 0 : index
    %c0_1 = arith.constant 0 : index
    %0 = vector.load %arg1[%c0, %c0_0, %c0_1] : memref<1x4x256xf32, #tpu.memory_space<vmem>>, vector<1x4x256xf32>
    %1 = vector.shape_cast %0 : vector<1x4x256xf32> to vector<4x256xf32>
    %cst = arith.constant dense<0.000000e+00> : vector<4xf32>
    %2 = vector.multi_reduction <add>, %1, %cst [1] : vector<4x256xf32> to vector<4xf32>
    %3 = vector.shape_cast %2 : vector<4xf32> to vector<4x1xf32>
    %cst_2 = arith.constant 3.906250e-03 : f32
    %4 = vector.broadcast %cst_2 : f32 to vector<4x1xf32>
    %5 = arith.mulf %3, %4 : vector<4x1xf32>
    %c0_3 = arith.constant 0 : index
    %c0_4 = arith.constant 0 : index
    %6 = vector.load %arg2[%c0_3, %c0_4] : memref<2x4xf32, #tpu.memory_space<vmem>>, vector<2x4xf32>
    %cst_5 = arith.constant dense<0.000000e+00> : vector<2x1xf32>
    %7 = tpu.matmul %6, %5, %cst_5 {dimension_numbers = #tpu.dot_dimension_numbers<[1], [0], [0], [1], [0, 0, 1, 1], [], []>} : vector<2x4xf32>, vector<4x1xf32>, vector<2x1xf32> -> vector<2x1xf32>
    %c0_6 = arith.constant 0 : index
    %c0_7 = arith.constant 0 : index
    %8 = vector.load %arg3[%c0_6, %c0_7] : memref<2x1xf32, #tpu.memory_space<vmem>>, vector<2x1xf32>
    %9 = arith.addf %7, %8 : vector<2x1xf32>
    %cst_8 = arith.constant 0.000000e+00 : f32
    %10 = vector.broadcast %cst_8 : f32 to vector<2x1xf32>
    %11 = arith.maximumf %9, %10 : vector<2x1xf32>
    %c0_9 = arith.constant 0 : index
    %c0_10 = arith.constant 0 : index
    %12 = vector.load %arg4[%c0_9, %c0_10] : memref<4x2xf32, #tpu.memory_space<vmem>>, vector<4x2xf32>
    %cst_11 = arith.constant dense<0.000000e+00> : vector<4x1xf32>
    %13 = tpu.matmul %12, %11, %cst_11 {dimension_numbers = #tpu.dot_dimension_numbers<[1], [0], [0], [1], [0, 0, 1, 1], [], []>} : vector<4x2xf32>, vector<2x1xf32>, vector<4x1xf32> -> vector<4x1xf32>
    %c0_12 = arith.constant 0 : index
    %c0_13 = arith.constant 0 : index
    %14 = vector.load %arg5[%c0_12, %c0_13] : memref<4x1xf32, #tpu.memory_space<vmem>>, vector<4x1xf32>
    %15 = arith.addf %13, %14 : vector<4x1xf32>
    %16 = arith.negf %15 : vector<4x1xf32>
    %17 = math.exp %16 : vector<4x1xf32>
    %cst_14 = arith.constant 1.000000e+00 : f32
    %18 = vector.broadcast %cst_14 : f32 to vector<4x1xf32>
    %19 = arith.addf %18, %17 : vector<4x1xf32>
    %20 = arith.divf %18, %19 : vector<4x1xf32>
    %21 = vector.broadcast %20 : vector<4x1xf32> to vector<4x256xf32>
    %22 = arith.mulf %1, %21 : vector<4x256xf32>
    %c0_15 = arith.constant 0 : index
    %c0_16 = arith.constant 0 : index
    %c0_17 = arith.constant 0 : index
    %23 = vector.load %arg6[%c0_15, %c0_16, %c0_17] : memref<1x4x256xf32, #tpu.memory_space<vmem>>, vector<1x4x256xf32>
    %24 = vector.shape_cast %23 : vector<1x4x256xf32> to vector<4x256xf32>
    %25 = vector.shape_cast %22 : vector<4x256xf32> to vector<1x4x256xf32>
    tpu.vector_store %arg6[%c0_15, %c0_16, %c0_17], %25 {strides = array<i32>} : memref<1x4x256xf32, #tpu.memory_space<vmem>>, vector<1x4x256xf32>,
    return
  }
  func.func @transform_0(%arg0: i32) -> (i32, i32, i32) {
    %c0_i32 = arith.constant 0 : i32
    %c0_i32_0 = arith.constant 0 : i32
    %c0_i32_1 = arith.constant 0 : i32
    return %arg0, %c0_i32, %c0_i32_0 : i32, i32, i32
  }
  func.func @transform_1(%arg0: i32) -> (i32, i32) {
    %c0_i32 = arith.constant 0 : i32
    %c0_i32_0 = arith.constant 0 : i32
    %c0_i32_1 = arith.constant 0 : i32
    return %c0_i32, %c0_i32_0 : i32, i32
  }
  func.func @transform_2(%arg0: i32) -> (i32, i32) {
    %c0_i32 = arith.constant 0 : i32
    %c0_i32_0 = arith.constant 0 : i32
    %c0_i32_1 = arith.constant 0 : i32
    return %c0_i32, %c0_i32_0 : i32, i32
  }
  func.func @transform_3(%arg0: i32) -> (i32, i32) {
    %c0_i32 = arith.constant 0 : i32
    %c0_i32_0 = arith.constant 0 : i32
    %c0_i32_1 = arith.constant 0 : i32
    return %c0_i32, %c0_i32_0 : i32, i32
  }
  func.func @transform_4(%arg0: i32) -> (i32, i32) {
    %c0_i32 = arith.constant 0 : i32
    %c0_i32_0 = arith.constant 0 : i32
    %c0_i32_1 = arith.constant 0 : i32
    return %c0_i32, %c0_i32_0 : i32, i32
  }
  func.func @transform_5(%arg0: i32) -> (i32, i32, i32) {
    %c0_i32 = arith.constant 0 : i32
    %c0_i32_0 = arith.constant 0 : i32
    %c0_i32_1 = arith.constant 0 : i32
    return %arg0, %c0_i32, %c0_i32_0 : i32, i32, i32
  }
}

</mosaic_0001>

<bundles_post_ra>
// kernel: tpu_custom_call.1
= control target key start
LH: loop header
LB: loop body
LE: loop exit
PB: predicated region body
PF: predicated region fallthrough
CT: control target
= control target key end

     0   :  { %10 = vsyncpa [#allocation3], 0  ;;  %s781_s0 = inlined_call_operand.hbm [shape: f32[2,4,256], index: 0, kind: input, shape index: {}]   ;;  %s782_s1 = inlined_call_operand.vmem [shape: f32[2,4], index: 1, kind: input, shape index: {}]   ;;  %s783_s2 = inlined_call_operand.vmem [shape: f32[2,1], index: 2, kind: input, shape index: {}]   ;;  %s784_s3 = inlined_call_operand.vmem [shape: f32[4,2], index: 3, kind: input, shape index: {}]   ;;  %s785_s4 = inlined_call_operand.vmem [shape: f32[4,1], index: 4, kind: input, shape index: {}]   ;;  %s786_s5 = inlined_call_operand.hbm [shape: f32[2,4,256], index: 5, kind: output, shape index: {}]  }
   0x1   :  { %12 = vsyncpa [#allocation3 + $0x1], 0 }
   0x2   :  { %13 = vsyncpa [#allocation4], 0 }
   0x3   :  { %15 = vsyncpa [#allocation4 + $0x1], 0  ;;  %s638_s18 = smov 0   ;;  %s640_s19 = smov 0  }
   0x4   :  { %s642_s20 = smov 0   ;;  %s644_s21 = smov 0  }
   0x5 LB: > { %s659_s22 = sadd.s32 4294967295, %s604_s21   ;;  %s434_s23 = sadd.s32 4294967294, %s604_s21   ;;  %s604_s21 = sphi %s644_s21, %s796_s21   ;;  %s600_s20 = sphi %s642_s20, %s795_s20   ;;  %s596_s19 = sphi %s640_s19, %s794_s19   ;;  %s592_s18 = sphi %s638_s18, %s793_s18  }
   0x6   : > { %s663_s24 = sadd.s32 1, %s604_s21   ;;  %s28_s25 = sadd.s32 1, %s600_s20 }
   0x7   : > { %s25_s26 = ssub.s32 %s604_s21, %s663_s24  ;;  %p35_p0 = scmp.ne.s32.totalorder %s600_s20, %s596_s19 }
   0x8   : > { %p26_p1 = scmp.eq.s32.totalorder %s25_s26, 0  ;;  %p36_p2 = scmp.eq.s32.totalorder %s604_s21, 0 }
   0x9   : > { %p41_p3 = scmp.ne.s32.totalorder %s596_s19, %s592_s18  ;;  %p42_p4 = scmp.eq.s32.totalorder %s659_s22, 0 }
   0xa   : > { %s675_s27 = scalar_select %p26_p1, %s600_s20, %s28_s25  }
   0xb   : > { %p677_p5 = por %p36_p2, %p35_p0  ;;  %p681_p6 = por %p42_p4, %p41_p3 }
   0xc   : > { %p149_p7 = scmp.eq.s32.totalorder %s659_s22, 1  ;;  %p155_p8 = scmp.eq.s32.totalorder %s434_s23, 1 }
   0xd   : > { %p467_p10 = scmp.lt.s32.totalorder %s604_s21, 2  ;;  %s187_s7 = sand.u32 1, %s600_s20  }
   0xe   : > { %p688_p11 = por %p149_p7, %p35_p0  ;;  %p692_p12 = por %p155_p8, %p41_p3 }
   0xf   : > { %s453_s8 = sshll.u32 %s604_s21, 3  ;;  %s437_s9 = sshll.u32 %s187_s7, 3 }
  0x10   : > { %s196_s12 = scalar_lea.hbm %s781_s0, %s453_s8  ;;  %s191_s14 = scalar_lea.vmem [#allocation2], %s437_s9 }
  0x11   : > { %s198_s13 = sshll.u32 %s196_s12, 4  ;;  %s200_s15 = sshll.u32 %s191_s14, 4  ;;  %s199_s13 = int_to_ptr.hbm [resolvable:$true] %s198_s13  ;;  %s201_s15 = int_to_ptr.vmem [resolvable:$true] %s200_s15 }
  0x12   : > { %p703_p13 = pnand %p467_p10, %p677_p5  ;;  %p440_p0 = scmp.ge.s32.totalorder %s604_s21, 1 }
  0x13   : > { %p205_p1 = scmp.lt.s32.totalorder %s604_s21, 3  ;;  %s188_s17 = scalar_lea.sflag [#allocation3], %s187_s7 }
  0x14   : > { %s508_s23 = sshra.s32 %s199_s13, 4  ;;  %p512_p3 = pneg %p703_p13  ;;  %s509_s23 = int_to_ptr.hbm [resolvable:$true] %s508_s23 }
  0x15   : > { %s510_s25 = scalar_lea.hbm %s509_s23, 8  ;;  %s515_s28 = scalar_lea.hbm %s781_s0, 16 }
  0x16   : > { %p511_p2 = scmp.ne.s32.totalorder %s509_s23, %s510_s25  ;;  %p516_p5 = scmp.lt.s32.totalorder %s509_s23, %s781_s0 }
  0x17   : > { %p517_p8 = scmp.lt.s32.totalorder %s515_s28, %s510_s25 }
  0x18   : > { %p513_p4 = pnand %p512_p3, %p511_p2 }
  0x19   : > { %p518_p10 = por %p517_p8, %p516_p5 }
  0x1a   : > { %p514_p7 = pneg %p513_p4 }
  0x1c   : > { %p519_p9 = pnand %p518_p10, %p514_p7 }
  0x1e   : > { %522 = shalt.err (!%p519_p9)
}
  0x1f   : > { %462 = dma.hbm_to_vmem [thread:$0]  (!%p703_p13), %s199_s13, 128, %s201_s15, %s188_s17  }
  0x20   : > { %p206_p2 = pnand %p440_p0, %p205_p1 }
  0x21   : > { %s724_s7 = sand.u32 (!%p206_p2), 1, %s596_s19  }
  0x22   : > { %209 = sbr.rel (%p206_p2) target bundleno = 580 (0x244), region = 40  ;;  %s441_s11 = sshll.u32 (!%p206_p2), %s724_s7, 3 }
  0x23   : > { %s212_s12 = scalar_lea.sflag (!%p206_p2), [#allocation3], %s724_s7  ;;  %s215_s14 = scalar_lea.vmem (!%p206_p2), [#allocation2], %s441_s11 }
  0x27   : > { %583 = dma.done.wait (%p681_p6), %s212_s12, 128  }
  0x28   : > { %585 = vsyncadd (%p681_p6), %s212_s12, 4294967168  ;;  %v243_v0 = vld [vmem:[%s215_s14] sm:$0xff]  ;;  %vm250_vm0 = vcmask 1043456   ;;  %v257_v8 = vld [vmem:[%s782_s1] sm:$0x3]  ;;  %vm259_vm1 = vcmask 31744  }
  0x29   : > { %245 = vst [vmem:[#allocation1] ss:$2 sm:$0xff] %v243_v0  ;;  %v258_v9 = vld [vmem:[%s783_s2] sm:$0x3]  ;;  %vm293_vm2 = vcmask 1041408   ;;  %vm289_vm3 = vcmask 15360  }
  0x2a   : > { %v287_v13 = vld [vmem:[%s784_s3] sm:$0xf]  ;;  %v606_v14 = vmov 0   ;;  %v607_v31 = vmov 839922192   ;;  %s454_s8 = sshll.u32 %s659_s22, 3 }
  0x2b   : > { %503 = vset.pattern.permute.xlu0 %v606_v14  ;;  %v288_v15 = vld [vmem:[%s785_s4] sm:$0xf]  ;;  %v341_v32 = vunpack.c.l.s4 %v607_v31  ;;  %s359_s10 = scalar_lea.hbm %s786_s5, %s454_s8  ;;  %s242_s12 = scalar_lea.vmem [#allocation5], %s441_s11 }
  0x2c   : > { %s361_s14 = sshll.u32 %s242_s12, 4  ;;  %s363_s13 = sshll.u32 %s359_s10, 4  ;;  %s362_s14 = int_to_ptr.vmem [resolvable:$true] %s361_s14  ;;  %s364_s13 = int_to_ptr.hbm [resolvable:$true] %s363_s13 }
  0x2d   : > { %v342_v33 = vunpack.c.0.s8 %v341_v32  ;;  %s348_s15 = scalar_lea.sflag [#allocation4], %s724_s7  ;;  %s552_s29 = sshra.s32 %s364_s13, 4  ;;  %s553_s29 = int_to_ptr.hbm [resolvable:$true] %s552_s29 }
  0x2e   : > { %s554_s22 = scalar_lea.hbm %s553_s29, 8  ;;  %s558_s23 = scalar_lea.hbm %s786_s5, 16 }
  0x2f   : > { %p555_p6 = scmp.ne.s32.totalorder %s553_s29, %s554_s22  ;;  %p559_p0 = scmp.lt.s32.totalorder %s553_s29, %s786_s5 }
  0x30   : > { %v246_v1 = vld.sshfl [vmem:[#allocation1] sm:$0xff pattern:$0x75316420]  ;;  %v247_v2 = vld.sshfl [vmem:[#allocation1 + $0x8] sm:$0xff pattern:$0x75316420]  ;;  %p560_p1 = scmp.lt.s32.totalorder %s558_s23, %s554_s22 }
  0x31   : > { %v251_v3 = vsel %vm250_vm0, %v246_v1, 0.0  ;;  %v252_v4 = vsel %vm250_vm0, %v247_v2, 0.0  ;;  %p556_p9 = pnand %p555_p6, %p688_p11 }
  0x32   : > { %v253_v5 = vadd.f32 %v252_v4, %v251_v3  ;;  %p561_p3 = por %p560_p1, %p559_p0 }
  0x33   : > { %p557_p13 = pneg %p556_p9 }
  0x34   : > { %254 = vadd.xlane.f32.xlu0 %v253_v5 }
  0x35   : > { %p562_p4 = pnand %p561_p3, %p557_p13 }
  0xa7   : > { %v255_v6 = vpop.xlane.xlu0 %254 }
  0xa8   : > { %v256_v7 = vmul.f32 0.00390625, %v255_v6 }
  0xaa   : > { %443 = vmatpush.msk.msra.mxu0 %vm250_vm0, %v256_v7 }
  0xab   : > { %444 = vmatmul.msk.f32.vlgmr.msra.gmra.mxu0 %vm259_vm1, %v257_v8 }
 0x128   : > { %v283_v10 = vpop.f32.mrf.mxu0 }
 0x129   : > { %v284_v11 = vadd.f32 %v283_v10, %v258_v9 }
 0x12b   : > { %v286_v12 = vmax.f32 %v284_v11, 0.0 }
 0x12d   : > { %445 = vmatpush.msk.msra.mxu1 %vm293_vm2, %v286_v12 }
 0x12e   : > { %446 = vmatmul.msk.f32.vlgmr.msra.gmra.mxu1 %vm289_vm3, %v287_v13 }
 0x1ab   : > { %v314_v16 = vpop.f32.mrf.mxu1 }
 0x1ac   : > { %v315_v17 = vadd.f32 %v314_v16, %v288_v15 }
 0x1ae   : > { %v447_v18 = vmul.f32 -1.442695, %v315_v17 }
 0x1b0   : > { %504 = vpow2.f32 %v447_v18 }
 0x1b6   : > { %v505_v19 = vpop.eup %504 }
 0x1b7   : > { %v320_v20 = vadd.f32 1.0, %v505_v19 }
 0x1b9   : > { %506 = vrcp.f32 %v320_v20  ;;  %v332_v24 = vand.u32 2147483648, %v320_v20  ;;  %v330_v26 = vand.u32 2147483647, %v320_v20  ;;  %vm326_vm5 = vweird.f32 %v320_v20 }
 0x1bb   : > { %v333_v28 = vor.u32 1.1754944e-38, %v332_v24  ;;  %vm331_vm7 = vcmp.eq.f32.partialorder %v330_v26, 8.507059e+37 }
 0x1bf   : > { %v507_v21 = vpop.eup %506 }
 0x1c0   : > { %v322_v22 = vmul.f32 %v507_v21, %v320_v20  ;;  %vm327_vm4 = vweird.f32 %v507_v21 }
 0x1c1   : > { %vm328_vm6 = vmor %vm326_vm5, %vm327_vm4 }
 0x1c2   : > { %v323_v23 = vsub.f32 1.0, %v322_v22 }
 0x1c4   : > { %v324_v25 = vmul.f32 %v507_v21, %v323_v23 }
 0x1c6   : > { %v325_v27 = vadd.f32 %v507_v21, %v324_v25 }
 0x1c8   : > { %v329_v29 = vsel %vm328_vm6, %v507_v21, %v325_v27 }
 0x1c9   : > { %v334_v30 = vsel %vm331_vm7, %v333_v28, %v329_v29 }
 0x1ca   : > { %338 = vperm.xlu0 %503, %v334_v30  }
 0x23c   : > { %v339_v34 = vpop.permute.xlu0 %338 }
 0x23d   : > { %v343_v35 = vperm.slane %v339_v34, %v342_v33 }
 0x23f   : > { %v345_v36 = vmul.f32 %v343_v35, %v243_v0 }
 0x241   : > { %346 = vst [vmem:[%s242_s12] sm:$0xff] %v345_v36 }
 0x242   : > { %565 = shalt.err (!%p562_p4)
}
 0x243   : > { %457 = dma.vmem_to_hbm [thread:$0]  (%p688_p11), %s362_s14, 128, %s364_s13, %s348_s15  }
 0x244 PF: > { %s375_s7 = sand.u32 1, %s592_s18   ;;  %p792_p7 = scmp.ge.s32.totalorder %s604_s21, 2 }
 0x245   : > { %s376_s26 = scalar_lea.sflag [#allocation4], %s375_s7 }
 0x246   : > { %p464_p5 = pnand %p792_p7, %p692_p12 }
 0x248   : > { %p465_p8 = pneg %p464_p5 }
 0x24a   : > { %587 = dma.done.wait (%p465_p8), %s376_s26, 128  }
 0x24b   : > { %589 = vsyncadd (%p465_p8), %s376_s26, 4294967168  ;;  %p18_p10 = scmp.ge.s32.totalorder %s663_s24, 4   ;;  %s793_s18 = smov %s596_s19 }
 0x24c   : > { %s794_s19 = smov %s600_s20  ;;  %s795_s20 = smov %s675_s27 }
 0x24d   : > { %s796_s21 = smov %s663_s24  ;;  %20 = sbr.rel (!%p18_p10) target bundleno = 5 (0x5), region = 85 }
 0x252   :  { %382 = vsyncpa [#allocation3], 1 }
 0x253   :  { %384 = vsyncpa [#allocation3 + $0x1], 1 }
 0x254   :  { %385 = vsyncpa [#allocation4], 1 }
 0x255   :  { %387 = vsyncpa [#allocation4 + $0x1], 1 }

</bundles_post_ra>
